<compile_context>
chip_gen: v5e
topology: v5e:2x2
jax: 0.10.0
libtpu: 0.0.40
codegen_flags: <defaults>
</compile_context>

<pallas_src>
import jax
import jax.numpy as jnp
from jax.experimental import pallas as pl
from jax.experimental.pallas import tpu as pltpu

EPS = 1e-5
LANE = 128
MIB = 1024 * 1024


def _round_up(x, m):
    return (x + m - 1) // m * m


def _physical_vmem_bytes():
    """Per-TensorCore VMEM: 128 MiB on v5e/v6e, 64 MiB on v7x."""
    try:
        info = pltpu.get_tpu_info()
        for attr in ("vmem_capacity_bytes", "vmem_size_bytes", "vmem_bytes"):
            v = getattr(info, attr, None)
            if v:
                return int(v)
    except Exception:
        pass
    kind = ""
    try:
        kind = jax.devices()[0].device_kind.lower()
    except Exception:
        pass
    if "v7" in kind or "7x" in kind:
        return 64 * MIB
    return 128 * MIB


# ---------------------------------------------------------------------------
# Pass 1: stats only.  h = x @ W1 + b1 is computed on the fly (never written
# to HBM); each (row-tile, Cmid-chunk) grid step writes its per-tile
# (sum, sum-of-squares) partials.  No row mask: padded zero rows give h == b1
# exactly and are corrected in the wrapper.
# ---------------------------------------------------------------------------
def conv1_stats_kernel(x_ref, w1_ref, b1_ref, stats_ref):
    h = jnp.dot(x_ref[...], w1_ref[...], preferred_element_type=jnp.float32)
    h = h + b1_ref[...]
    stats_ref[0:1, :] = jnp.sum(h, axis=0, keepdims=True)
    stats_ref[1:2, :] = jnp.sum(h * h, axis=0, keepdims=True)


# ---------------------------------------------------------------------------
# Pass 2: recompute conv1 with BN folded into W1'/shift', ReLU, conv2.
# Accumulates conv2 partial products over Cmid chunks directly in the
# (resident) f32 output block.
# ---------------------------------------------------------------------------
def fused_mlp_kernel(x_ref, w1s_ref, s_ref, w2_ref, b2_ref, o_ref):
    kc = pl.program_id(1)
    h = jnp.dot(x_ref[...], w1s_ref[...], preferred_element_type=jnp.float32)
    hn = jnp.maximum(h + s_ref[...], 0.0)                       # BN+ReLU (folded)
    part = jnp.dot(hn.astype(w2_ref.dtype), w2_ref[...],
                   preferred_element_type=jnp.float32)

    @pl.when(kc == 0)
    def _():
        o_ref[...] = part + b2_ref[...]

    @pl.when(kc != 0)
    def _():
        o_ref[...] = o_ref[...] + part


# ---------------------------------------------------------------------------
# Wrapper
# ---------------------------------------------------------------------------
def mlp2d_forward(x_nchw, w1, b1, gamma, beta, w2, b2, *,
                  row_tile=1024, compute_dtype=jnp.bfloat16):
    """x_nchw: (N, Cin, H, W) float32.  Returns (N, Cout, H, W) float32.

    compute_dtype is the MXU input dtype (bf16 default — MXU-native on
    v5e/v6e/v7x and halves x/W DMA bytes).  Accumulation, BN statistics and
    BN math are always float32.  Use compute_dtype=jnp.float32 for a
    bit-accurate debug path.
    """
    N, Cin, H, W = x_nchw.shape
    Cmid = w1.shape[1]
    Cout = w2.shape[1]
    M = N * H * W
    xbytes = jnp.dtype(compute_dtype).itemsize

    # --- generation-aware tiling (v5e/v6e: 128 MiB VMEM, v7x: 64 MiB) -------
    phys = _physical_vmem_bytes()
    budget = (phys * 3) // 4            # ~96 MiB on v5e/v6e, ~48 MiB on v7x

    def pass2_vmem(rt, ck):
        # lane/sublane-padded VMEM footprints (HBM traffic stays unpadded).
        cin_l = _round_up(Cin, LANE)
        cout_l = _round_up(Cout, LANE)
        ck_l = _round_up(ck, LANE)
        cin_s = _round_up(Cin, 8)
        ck_s = _round_up(ck, 8)
        tiles = 2 * rt * cin_l * xbytes + 2 * rt * cout_l * 4   # dbl-buf x / out
        wts = (2 * (cin_s * ck_l + ck_s * cout_l) * xbytes
               + 2 * (ck_l + cout_l) * 4)                        # weights / biases
        tmps = 2 * rt * ck_l * 4                                 # h / hn f32 temps
        return tiles + wts + tmps

    rt = _round_up(max(8, min(row_tile, M)), 8)

    # Cmid chunk: keeps the (rt, Cmid) f32 temporaries bounded (v7x + 4096).
    ck = Cmid
    if pass2_vmem(rt, ck) > budget and Cmid % LANE == 0:
        for cand in (4096, 2048, 1024, 512, 256, 128):
            if cand < Cmid and Cmid % cand == 0:
                ck = cand
                if pass2_vmem(rt, ck) <= budget:
                    break
    while rt > 128 and pass2_vmem(rt, ck) > budget:
        rt = _round_up(max(rt // 2, 8), 8)

    n_tiles = -(-M // rt)
    if n_tiles < 2 and M > 16:          # keep both v7x TensorCores busy
        rt = _round_up(-(-M // 2), 8)
        n_tiles = -(-M // rt)
    m_pad = n_tiles * rt
    n_kc = Cmid // ck
    vmem_limit = int(min(phys - 8 * MIB,
                         max(2 * pass2_vmem(rt, ck), 32 * MIB)))

    # --- NCHW -> NHWC -> (M, Cin); no channel padding (full-dim blocks) -----
    # TODO(synk): accept/emit NHWC (or go NCHW-native with C on sublanes) to
    # drop these two transposes; the surrounding PixPro model is NCHW.
    x2d = jnp.transpose(x_nchw, (0, 2, 3, 1)).reshape(M, Cin)
    if m_pad != M:
        x2d = jnp.pad(x2d, ((0, m_pad - M), (0, 0)))
    x2d = x2d.astype(compute_dtype)

    w1_c = w1.astype(compute_dtype)
    b1_f32 = b1.astype(jnp.float32)
    b1_2d = b1_f32.reshape(1, Cmid)

    # ---- pass 1: per-(row-tile, Cmid-chunk) BN statistic partials ----------
    flops1 = 2 * M * Cin * Cmid + 3 * M * Cmid
    bytes1 = (xbytes * (m_pad * Cin + Cin * Cmid)
              + 4 * (Cmid + n_tiles * 2 * Cmid))
    partial_stats = pl.pallas_call(
        conv1_stats_kernel,
        out_shape=jax.ShapeDtypeStruct((n_tiles, 2, Cmid), jnp.float32),
        grid_spec=pltpu.PrefetchScalarGridSpec(
            num_scalar_prefetch=0,
            grid=(n_tiles, n_kc),
            in_specs=[
                pl.BlockSpec((rt, Cin), lambda i, c: (i, 0)),
                pl.BlockSpec((Cin, ck), lambda i, c: (0, c)),
                pl.BlockSpec((1, ck), lambda i, c: (0, c)),
            ],
            out_specs=pl.BlockSpec((None, 2, ck), lambda i, c: (i, 0, c)),
        ),
        compiler_params=pltpu.CompilerParams(
            dimension_semantics=("parallel", "parallel"),
            vmem_limit_bytes=vmem_limit),
        cost_estimate=pl.CostEstimate(
            flops=int(flops1), transcendentals=0, bytes_accessed=int(bytes1)),
    )(x2d, w1_c, b1_2d)

    # ---- fold stats into per-channel affine, then into W1 / bias -----------
    sums = jnp.sum(partial_stats, axis=0)             # (2, Cmid) f32
    pad_rows = m_pad - M
    # padded (zero) x rows contribute exactly h == b1: correct here instead of
    # masking every tile inside the kernel.
    sum_h = sums[0] - pad_rows * b1_f32
    sum_h2 = sums[1] - pad_rows * b1_f32 * b1_f32
    mean = sum_h / M
    var = jnp.maximum(sum_h2 / M - mean * mean, 0.0)   # biased var (BN training)
    inv_std = jax.lax.rsqrt(var + EPS)
    scale = gamma.astype(jnp.float32) * inv_std
    shift = beta.astype(jnp.float32) - mean * scale
    # BN folded into conv1:  relu(x @ (W1*scale) + (shift + b1*scale))
    w1s = (w1.astype(jnp.float32) * scale[None, :]).astype(compute_dtype)
    bias1 = (shift + b1_f32 * scale).reshape(1, Cmid)  # f32

    w2_c = w2.astype(compute_dtype)
    b2_2d = b2.astype(jnp.float32).reshape(1, Cout)

    # ---- pass 2: recompute conv1 (BN-folded) + ReLU + conv2, fused ---------
    flops2 = 2 * M * Cin * Cmid + 2 * M * Cmid * Cout + 2 * M * Cmid
    bytes2 = (xbytes * (m_pad * Cin + Cin * Cmid + Cmid * Cout)
              + 4 * (Cmid + Cout + m_pad * Cout))
    out2d = pl.pallas_call(
        fused_mlp_kernel,
        out_shape=jax.ShapeDtypeStruct((m_pad, Cout), jnp.float32),
        grid_spec=pltpu.PrefetchScalarGridSpec(
            num_scalar_prefetch=0,
            grid=(n_tiles, n_kc),
            in_specs=[
                pl.BlockSpec((rt, Cin), lambda i, c: (i, 0)),
                pl.BlockSpec((Cin, ck), lambda i, c: (0, c)),
                pl.BlockSpec((1, ck), lambda i, c: (0, c)),
                pl.BlockSpec((ck, Cout), lambda i, c: (c, 0)),
                pl.BlockSpec((1, Cout), lambda i, c: (0, 0)),
            ],
            out_specs=pl.BlockSpec((rt, Cout), lambda i, c: (i, 0)),
        ),
        compiler_params=pltpu.CompilerParams(
            dimension_semantics=("parallel", "arbitrary"),
            vmem_limit_bytes=vmem_limit),
        cost_estimate=pl.CostEstimate(
            flops=int(flops2), transcendentals=0, bytes_accessed=int(bytes2)),
    )(x2d, w1s, bias1, w2_c, b2_2d)

    # strip row padding: (m_pad, Cout) -> (M, Cout) -> NHWC -> NCHW
    out2d = out2d[:M]
    return jnp.transpose(out2d.reshape(N, H, W, Cout), (0, 3, 1, 2))


# ---------------------------------------------------------------------------
# Pure-JAX reference (for correctness verification)
# ---------------------------------------------------------------------------
def mlp2d_reference(x_nchw, w1, b1, gamma, beta, w2, b2):
    N, Cin, H, W = x_nchw.shape
    x2d = jnp.transpose(x_nchw, (0, 2, 3, 1)).reshape(-1, Cin)
    h = x2d @ w1 + b1
    mean = h.mean(axis=0)
    var = h.var(axis=0)                               # biased, as in BN training
    hn = (h - mean) / jnp.sqrt(var + EPS) * gamma + beta
    hn = jnp.maximum(hn, 0.0)
    o = hn @ w2 + b2
    Cout = w2.shape[1]
    return jnp.transpose(o.reshape(N, H, W, Cout), (0, 3, 1, 2))


if __name__ == "__main__":
    # Small shapes consistent with MLP2d(in_dim, inner_dim, out_dim)
    N, Cin, H, W = 2, 4, 16, 16
    Cinner, Cout = 64, 32

    key = jax.random.PRNGKey(0)
    kx, k1, kb1, k2, kb2, kg, kb = jax.random.split(key, 7)

    x = jax.random.normal(kx, (N, Cin, H, W), dtype=jnp.float32)

    # conv1x1 weights are (Cout, Cin, 1, 1) in PyTorch; stored here as
    # (Cin, Cout) matmul matrices.
    w1 = jax.random.normal(k1, (Cin, Cinner), dtype=jnp.float32) * 0.1
    b1 = jax.random.normal(kb1, (Cinner,), dtype=jnp.float32) * 0.1
    gamma = 1.0 + 0.1 * jax.random.normal(kg, (Cinner,), dtype=jnp.float32)
    beta = 0.1 * jax.random.normal(kb, (Cinner,), dtype=jnp.float32)
    w2 = jax.random.normal(k2, (Cinner, Cout), dtype=jnp.float32) * 0.1
    b2 = jax.random.normal(kb2, (Cout,), dtype=jnp.float32) * 0.1

    ref = mlp2d_reference(x, w1, b1, gamma, beta, w2, b2)

    # f32 debug path: tight tolerance.
    out_f32 = jax.block_until_ready(
        mlp2d_forward(x, w1, b1, gamma, beta, w2, b2,
                      compute_dtype=jnp.float32))
    assert out_f32.shape == (N, Cout, H, W)
    assert jnp.allclose(out_f32, ref, atol=1e-4, rtol=1e-4), (
        float(jnp.max(jnp.abs(out_f32 - ref))))

    # default bf16 MXU path: f32 accumulation/stats, looser tolerance.
    out_bf16 = jax.block_until_ready(
        mlp2d_forward(x, w1, b1, gamma, beta, w2, b2))
    assert out_bf16.shape == (N, Cout, H, W)
    assert jnp.allclose(out_bf16, ref, atol=5e-2, rtol=5e-2), (
        float(jnp.max(jnp.abs(out_bf16 - ref))))

    print("KERNEL_OK")
</pallas_src>

<mosaic_0001>
module attributes {stable_mosaic.version = 11 : i64} {
  func.func @conv1_stats_kernel(%arg0: i32, %arg1: i32, %arg2: memref<256x4xf32, #tpu.memory_space<vmem>>, %arg3: memref<4x64xf32, #tpu.memory_space<vmem>>, %arg4: memref<1x64xf32, #tpu.memory_space<vmem>>, %arg5: memref<1x2x64xf32, #tpu.memory_space<vmem>>) attributes {dimension_semantics = [#tpu.dimension_semantics<parallel>, #tpu.dimension_semantics<parallel>], iteration_bounds = array<i64: 2, 1>, scalar_prefetch = 0 : i64, scratch_operands = 0 : i64, tpu.core_type = #tpu.core_type<tc>, window_params = [{transform_indices = @transform_0, window_bounds = array<i64: 256, 4>}, {transform_indices = @transform_1, window_bounds = array<i64: 4, 64>}, {transform_indices = @transform_2, window_bounds = array<i64: 1, 64>}, {transform_indices = @transform_3, window_bounds = array<i64: 1, 2, 64>}]} {
    %c0 = arith.constant 0 : index
    %c0_0 = arith.constant 0 : index
    %0 = vector.load %arg2[%c0, %c0_0] : memref<256x4xf32, #tpu.memory_space<vmem>>, vector<256x4xf32>
    %c0_1 = arith.constant 0 : index
    %c0_2 = arith.constant 0 : index
    %1 = vector.load %arg3[%c0_1, %c0_2] : memref<4x64xf32, #tpu.memory_space<vmem>>, vector<4x64xf32>
    %cst = arith.constant dense<0.000000e+00> : vector<256x64xf32>
    %2 = tpu.matmul %0, %1, %cst {dimension_numbers = #tpu.dot_dimension_numbers<[1], [0], [0], [1], [0, 0, 1, 1], [], []>} : vector<256x4xf32>, vector<4x64xf32>, vector<256x64xf32> -> vector<256x64xf32>
    %c0_3 = arith.constant 0 : index
    %c0_4 = arith.constant 0 : index
    %3 = vector.load %arg4[%c0_3, %c0_4] : memref<1x64xf32, #tpu.memory_space<vmem>>, vector<1x64xf32>
    %4 = vector.broadcast %3 : vector<1x64xf32> to vector<256x64xf32>
    %5 = arith.addf %2, %4 : vector<256x64xf32>
    %cst_5 = arith.constant dense<0.000000e+00> : vector<64xf32>
    %6 = vector.multi_reduction <add>, %5, %cst_5 [0] : vector<256x64xf32> to vector<64xf32>
    %7 = vector.shape_cast %6 : vector<64xf32> to vector<1x64xf32>
    %c0_6 = arith.constant 0 : index
    %c0_7 = arith.constant 0 : index
    %c0_8 = arith.constant 0 : index
    %8 = vector.load %arg5[%c0_6, %c0_7, %c0_8] : memref<1x2x64xf32, #tpu.memory_space<vmem>>, vector<1x1x64xf32>
    %9 = vector.shape_cast %8 : vector<1x1x64xf32> to vector<1x64xf32>
    %10 = vector.shape_cast %7 : vector<1x64xf32> to vector<1x1x64xf32>
    tpu.vector_store %arg5[%c0_6, %c0_7, %c0_8], %10 {strides = array<i32>} : memref<1x2x64xf32, #tpu.memory_space<vmem>>, vector<1x1x64xf32>,
    %11 = arith.mulf %5, %5 : vector<256x64xf32>
    %cst_9 = arith.constant dense<0.000000e+00> : vector<64xf32>
    %12 = vector.multi_reduction <add>, %11, %cst_9 [0] : vector<256x64xf32> to vector<64xf32>
    %13 = vector.shape_cast %12 : vector<64xf32> to vector<1x64xf32>
    %c0_10 = arith.constant 0 : index
    %c1 = arith.constant 1 : index
    %c0_11 = arith.constant 0 : index
    %14 = vector.load %arg5[%c0_10, %c1, %c0_11] : memref<1x2x64xf32, #tpu.memory_space<vmem>>, vector<1x1x64xf32>
    %15 = vector.shape_cast %14 : vector<1x1x64xf32> to vector<1x64xf32>
    %16 = vector.shape_cast %13 : vector<1x64xf32> to vector<1x1x64xf32>
    tpu.vector_store %arg5[%c0_10, %c1, %c0_11], %16 {strides = array<i32>} : memref<1x2x64xf32, #tpu.memory_space<vmem>>, vector<1x1x64xf32>,
    return
  }
  func.func @transform_0(%arg0: i32, %arg1: i32) -> (i32, i32) {
    %c0_i32 = arith.constant 0 : i32
    %c0_i32_0 = arith.constant 0 : i32
    return %arg0, %c0_i32 : i32, i32
  }
  func.func @transform_1(%arg0: i32, %arg1: i32) -> (i32, i32) {
    %c0_i32 = arith.constant 0 : i32
    %c0_i32_0 = arith.constant 0 : i32
    return %c0_i32, %arg1 : i32, i32
  }
  func.func @transform_2(%arg0: i32, %arg1: i32) -> (i32, i32) {
    %c0_i32 = arith.constant 0 : i32
    %c0_i32_0 = arith.constant 0 : i32
    return %c0_i32, %arg1 : i32, i32
  }
  func.func @transform_3(%arg0: i32, %arg1: i32) -> (i32, i32, i32) {
    %c0_i32 = arith.constant 0 : i32
    %c0_i32_0 = arith.constant 0 : i32
    return %arg0, %c0_i32, %arg1 : i32, i32, i32
  }
}

</mosaic_0001>

<bundles_post_ra>
// kernel: tpu_custom_call.1
= control target key start
LH: loop header
LB: loop body
LE: loop exit
PB: predicated region body
PF: predicated region fallthrough
CT: control target
= control target key end

     0   :  { %8 = vsyncpa [#allocation3], 0  ;;  %s1270_s0 = inlined_call_operand.vmem [shape: f32[512,4], index: 0, kind: input, shape index: {}]   ;;  %s1271_s1 = inlined_call_operand.vmem [shape: f32[4,64], index: 1, kind: input, shape index: {}]   ;;  %s1272_s2 = inlined_call_operand.vmem [shape: f32[1,64], index: 2, kind: input, shape index: {}]   ;;  %s1273_s3 = inlined_call_operand.hbm [shape: f32[2,2,64], index: 3, kind: output, shape index: {}]  }
   0x1   :  { %10 = vsyncpa [#allocation3 + $0x1], 0  ;;  %s959_s12 = smov 0   ;;  %s961_s13 = smov 0  }
   0x2   :  { %s963_s14 = smov 0   ;;  %s965_s15 = smov 0  }
   0x3   :  { %s967_s16 = smov 0   ;;  %s969_s17 = smov 0  }
   0x4 LB: > { %s753_s18 = sadd.s32 4294967295, %s937_s17   ;;  %s754_s19 = sadd.s32 4294967294, %s937_s17   ;;  %s937_s17 = sphi %s969_s17, %s16_s17   ;;  %s933_s16 = sphi %s967_s16, %s1280_s16   ;;  %s929_s15 = sphi %s965_s15, %s1279_s15   ;;  %s925_s14 = sphi %s963_s14, %s1278_s14   ;;  %s921_s13 = sphi %s961_s13, %s1277_s13   ;;  %s917_s12 = sphi %s959_s12, %s1276_s12  }
   0x5   : > { %s28_s20 = sadd.s32 1, %s933_s16  ;;  %s115_s21 = sadd.s32 1, %s925_s14 }
   0x6   : > { %p30_p0 = scmp.ge.s32.totalorder %s28_s20, 2  ;;  %p125_p1 = scmp.ne.s32.totalorder %s925_s14, %s921_s13 }
   0x7   : > { %p126_p2 = scmp.eq.s32.totalorder %s753_s18, 1  ;;  %p131_p3 = scmp.ne.s32.totalorder %s921_s13, %s917_s12 }
   0x8   : > { %s1282_s20 = smov (%p30_p0, %s28_s20), 0  ;;  %p132_p5 = scmp.eq.s32.totalorder %s754_s19, 1 }
   0x9   : > { %p999_p4 = por %p126_p2, %p125_p1  ;;  %s110_s23 = ssub.s32 %s933_s16, %s1282_s20 }
   0xa   : > { %p759_p6 = scmp.ge.s32.totalorder %s937_s17, 1  ;;  %p113_p7 = scmp.eq.s32.totalorder %s110_s23, 0 }
   0xb   : > { %p1006_p8 = por %p132_p5, %p131_p3  ;;  %p172_p9 = scmp.lt.s32.totalorder %s937_s17, 3 }
   0xc   : > { %s1012_s25 = scalar_select %p113_p7, %s925_s14, %s115_s21  }
   0xd   : > { %p173_p10 = pnand %p759_p6, %p172_p9 }
   0xe   : > { %s761_s28 = sshll.u32 (!%p173_p10), %s929_s15, 5  ;;  %s200_s8 = sand.u32 (!%p173_p10), 1, %s921_s13  }
   0xf   : > { %176 = sbr.rel (%p173_p10) target bundleno = 276 (0x114), region = 32  ;;  %p204_p11 = scmp.lt.s32.totalorder (!%p173_p10), %s761_s28, 63 }
  0x10   : > { %s760_s9 = sshll.u32 (!%p173_p10), %s200_s8, 1  ;;  %s797_s10 = sshll.u32 (!%p173_p10), %s929_s15, 1 }
  0x11   : > { %s653_s19 = scalar_lea.hbm (!%p173_p10), %s1273_s3, %s797_s10  ;;  %s202_s21 = scalar_lea.vmem (!%p173_p10), [#allocation2], %s760_s9 }
  0x12   : > { %s655_s23 = sshll.u32 (!%p173_p10), %s202_s21, 4  ;;  %s657_s26 = sshll.u32 (!%p173_p10), %s653_s19, 4  ;;  %s656_s23 = int_to_ptr.vmem [resolvable:$true] %s655_s23  ;;  %s658_s26 = int_to_ptr.hbm [resolvable:$true] %s657_s26 }
  0x13   : > { %s642_s15 = scalar_lea.sflag (!%p173_p10), [#allocation3], %s200_s8  ;;  %s873_s27 = sshra.s32 (!%p173_p10), %s658_s26, 4  ;;  %s874_s27 = int_to_ptr.hbm [resolvable:$true] %s873_s27 }
  0x14   : > { %v248_v0 = vld [vmem:[%s1271_s1] sm:$0xf]  ;;  %vm350_vm0 = vcmask 1043456   ;;  %s1284_s28 = smov (!%p204_p11, %s761_s28), 63  ;;  %vm253_vm1 = vcmask 31744   ;;  %vm467_vm2 = vcmask 523264   ;;  %p880_p1 = scmp.lt.s32.totalorder %s874_s27, %s1273_s3 }
  0x15   : > { %763 = vmatpush.msk.msra.mxu0 %vm350_vm0, %v248_v0  ;;  %800 = vmatpush.msk.msra.mxu1 %vm350_vm0, %v248_v0  ;;  %s762_s29 = sshll.u32 %s1284_s28, 3  ;;  %v1102_v47 = vld [vmem:[%s1272_s2] ss:$0 sm:$0xff]  ;;  %vm537_vm3 = vcmask 516096   ;;  %s875_s28 = scalar_lea.hbm %s874_s27, 2 }
  0x16   : > { %801 = vmatpush.msk.msra.mxu2 %vm350_vm0, %v248_v0  ;;  %802 = vmatpush.msk.msra.mxu3 %vm350_vm0, %v248_v0  ;;  %s1021_s5 = scalar_lea.vmem %s1270_s0, %s762_s29  ;;  %p876_p12 = scmp.ne.s32.totalorder %s874_s27, %s875_s28 }
  0x17   : > { %v216_v1 = vld [vmem:[%s1021_s5] sm:$0xff]  ;;  %v217_v4 = vld [vmem:[%s1021_s5 + $0x8] sm:$0xff]  ;;  %v218_v8 = vld [vmem:[%s1021_s5 + $0x10] sm:$0xff]  ;;  %s879_s4 = scalar_lea.hbm %s1273_s3, 4 }
  0x18   : > { %764 = vmatmul.msk.f32.vlgmr.msra.gmra.mxu0 %vm253_vm1, %v216_v1  ;;  %v224_v2 = vld [vmem:[%s1021_s5 + $0x40] sm:$0xff]  ;;  %v225_v5 = vld [vmem:[%s1021_s5 + $0x48] sm:$0xff]  ;;  %v226_v9 = vld [vmem:[%s1021_s5 + $0x50] sm:$0xff]  ;;  %p877_p13 = pnand %p876_p12, %p999_p4  ;;  %p881_p2 = scmp.lt.s32.totalorder %s879_s4, %s875_s28 }
  0x19   : > { %772 = vmatmul.msk.f32.vlgmr.msra.gmra.mxu1 %vm253_vm1, %v224_v2  ;;  %v232_v3 = vld [vmem:[%s1021_s5 + $0x80] sm:$0xff]  ;;  %v233_v6 = vld [vmem:[%s1021_s5 + $0x88] sm:$0xff]  ;;  %v234_v10 = vld [vmem:[%s1021_s5 + $0x90] sm:$0xff] }
  0x1a   : > { %780 = vmatmul.msk.f32.vlgmr.msra.gmra.mxu2 %vm253_vm1, %v232_v3  ;;  %v240_v7 = vld [vmem:[%s1021_s5 + $0xc0] sm:$0xff]  ;;  %v241_v11 = vld [vmem:[%s1021_s5 + $0xc8] sm:$0xff]  ;;  %v219_v12 = vld [vmem:[%s1021_s5 + $0x18] sm:$0xff]  ;;  %p878_p0 = pneg %p877_p13  ;;  %p882_p3 = por %p881_p2, %p880_p1 }
  0x1b   : > { %788 = vmatmul.msk.f32.vlgmr.msra.gmra.mxu3 %vm253_vm1, %v240_v7  ;;  %v227_v13 = vld [vmem:[%s1021_s5 + $0x58] sm:$0xff]  ;;  %v242_v15 = vld [vmem:[%s1021_s5 + $0xd0] sm:$0xff]  ;;  %v220_v16 = vld [vmem:[%s1021_s5 + $0x20] sm:$0xff] }
  0x1c   : > { %v235_v14 = vld [vmem:[%s1021_s5 + $0x98] sm:$0xff]  ;;  %v228_v17 = vld [vmem:[%s1021_s5 + $0x60] sm:$0xff]  ;;  %v221_v20 = vld [vmem:[%s1021_s5 + $0x28] sm:$0xff]  ;;  %p883_p5 = pnand %p882_p3, %p878_p0 }
  0x1d   : > { %v243_v18 = vld [vmem:[%s1021_s5 + $0xd8] sm:$0xff]  ;;  %v236_v19 = vld [vmem:[%s1021_s5 + $0xa0] sm:$0xff]  ;;  %v229_v21 = vld [vmem:[%s1021_s5 + $0x68] sm:$0xff] }
  0x1e   : > { %v244_v22 = vld [vmem:[%s1021_s5 + $0xe0] sm:$0xff]  ;;  %v237_v23 = vld [vmem:[%s1021_s5 + $0xa8] sm:$0xff]  ;;  %v222_v24 = vld [vmem:[%s1021_s5 + $0x30] sm:$0xff] }
  0x1f   : > { %v230_v25 = vld [vmem:[%s1021_s5 + $0x70] sm:$0xff]  ;;  %v245_v26 = vld [vmem:[%s1021_s5 + $0xe8] sm:$0xff]  ;;  %v223_v28 = vld [vmem:[%s1021_s5 + $0x38] sm:$0xff] }
  0x20   : > { %765 = vmatmul.msk.f32.gmra.mxu0 %vm253_vm1, %v217_v4  ;;  %v238_v27 = vld [vmem:[%s1021_s5 + $0xb0] sm:$0xff]  ;;  %v231_v29 = vld [vmem:[%s1021_s5 + $0x78] sm:$0xff] }
  0x21   : > { %773 = vmatmul.msk.f32.gmra.mxu1 %vm253_vm1, %v225_v5  ;;  %v246_v30 = vld [vmem:[%s1021_s5 + $0xf0] sm:$0xff]  ;;  %v239_v31 = vld [vmem:[%s1021_s5 + $0xb8] sm:$0xff] }
  0x22   : > { %781 = vmatmul.msk.f32.gmra.mxu2 %vm253_vm1, %v233_v6  ;;  %v247_v32 = vld [vmem:[%s1021_s5 + $0xf8] sm:$0xff] }
  0x23   : > { %789 = vmatmul.msk.f32.gmra.mxu3 %vm253_vm1, %v241_v11 }
  0x28   : > { %766 = vmatmul.msk.f32.gmra.mxu0 %vm253_vm1, %v218_v8 }
  0x29   : > { %774 = vmatmul.msk.f32.gmra.mxu1 %vm253_vm1, %v226_v9 }
  0x2a   : > { %782 = vmatmul.msk.f32.gmra.mxu2 %vm253_vm1, %v234_v10 }
  0x2b   : > { %790 = vmatmul.msk.f32.gmra.mxu3 %vm253_vm1, %v242_v15 }
  0x30   : > { %767 = vmatmul.msk.f32.gmra.mxu0 %vm253_vm1, %v219_v12 }
  0x31   : > { %775 = vmatmul.msk.f32.gmra.mxu1 %vm253_vm1, %v227_v13 }
  0x32   : > { %783 = vmatmul.msk.f32.gmra.mxu2 %vm253_vm1, %v235_v14 }
  0x33   : > { %791 = vmatmul.msk.f32.gmra.mxu3 %vm253_vm1, %v243_v18 }
  0x38   : > { %768 = vmatmul.msk.f32.gmra.mxu0 %vm253_vm1, %v220_v16 }
  0x39   : > { %776 = vmatmul.msk.f32.gmra.mxu1 %vm253_vm1, %v228_v17 }
  0x3a   : > { %784 = vmatmul.msk.f32.gmra.mxu2 %vm253_vm1, %v236_v19 }
  0x3b   : > { %792 = vmatmul.msk.f32.gmra.mxu3 %vm253_vm1, %v244_v22 }
  0x40   : > { %769 = vmatmul.msk.f32.gmra.mxu0 %vm253_vm1, %v221_v20 }
  0x41   : > { %777 = vmatmul.msk.f32.gmra.mxu1 %vm253_vm1, %v229_v21 }
  0x42   : > { %785 = vmatmul.msk.f32.gmra.mxu2 %vm253_vm1, %v237_v23 }
  0x43   : > { %793 = vmatmul.msk.f32.gmra.mxu3 %vm253_vm1, %v245_v26 }
  0x48   : > { %770 = vmatmul.msk.f32.gmra.mxu0 %vm253_vm1, %v222_v24 }
  0x49   : > { %778 = vmatmul.msk.f32.gmra.mxu1 %vm253_vm1, %v230_v25 }
  0x4a   : > { %786 = vmatmul.msk.f32.gmra.mxu2 %vm253_vm1, %v238_v27 }
  0x4b   : > { %794 = vmatmul.msk.f32.gmra.mxu3 %vm253_vm1, %v246_v30 }
  0x50   : > { %771 = vmatmul.msk.f32.gmra.mxu0 %vm253_vm1, %v223_v28 }
  0x51   : > { %779 = vmatmul.msk.f32.gmra.mxu1 %vm253_vm1, %v231_v29 }
  0x52   : > { %787 = vmatmul.msk.f32.gmra.mxu2 %vm253_vm1, %v239_v31 }
  0x53   : > { %795 = vmatmul.msk.f32.gmra.mxu3 %vm253_vm1, %v247_v32 }
  0x95   : > { %v371_v33 = vpop.f32.mrf.mxu0 }
  0x96   : > { %v395_v34 = vpop.f32.mrf.mxu1  ;;  %v372_v50 = vadd.f32 %v1102_v47, %v371_v33 }
  0x97   : > { %v396_v24 = vadd.f32 %v1102_v47, %v395_v34 }
  0x98   : > { %v539_v56 = vmul.f32 %v372_v50, %v372_v50  ;;  %v468_v61 = vsel %vm467_vm2, %v372_v50, 0.0 }
  0x99   : > { %v547_v34 = vmul.f32 %v396_v24, %v396_v24 }
  0x9a   : > { %v571_v3 = vsel %vm467_vm2, %v539_v56, 0.0 }
  0x9d   : > { %v374_v35 = vpop.f32.mrf.mxu0  ;;  %v1087_v37 = vpop.f32.mrf.mxu2 }
  0x9e   : > { %v398_v36 = vpop.f32.mrf.mxu1  ;;  %v1093_v43 = vpop.f32.mrf.mxu3  ;;  %v375_v49 = vadd.f32 %v1102_v47, %v374_v35 }
  0x9f   : > { %v399_v31 = vadd.f32 %v1102_v47, %v398_v36 }
  0xa0   : > { %v540_v54 = vmul.f32 %v375_v49, %v375_v49  ;;  %v469_v58 = vsel %vm467_vm2, %v375_v49, 0.0 }
  0xa1   : > { %v470_v4 = vadd.f32 %v469_v58, %v468_v61  ;;  %v485_v61 = vsel %vm467_vm2, %v399_v31, 0.0 }
  0xa2   : > { %v572_v63 = vsel %vm467_vm2, %v540_v54, 0.0  ;;  %v483_v54 = vsel %vm467_vm2, %v396_v24, 0.0 }
  0xa3   : > { %v573_v10 = vadd.f32 %v572_v63, %v571_v3 }
  0xa5   : > { %v377_v38 = vpop.f32.mrf.mxu0  ;;  %v1089_v40 = vpop.f32.mrf.mxu2 }
  0xa6   : > { %v401_v39 = vpop.f32.mrf.mxu1  ;;  %v1104_v48 = vpop.f32.mrf.mxu3  ;;  %v378_v53 = vadd.f32 %v1102_v47, %v377_v38 }
  0xa7   : > { %v402_v35 = vadd.f32 %v1102_v47, %v401_v39 }
  0xa8   : > { %v541_v59 = vmul.f32 %v378_v53, %v378_v53  ;;  %v471_v0 = vsel %vm467_vm2, %v378_v53, 0.0 }
  0xa9   : > { %v472_v11 = vadd.f32 %v471_v0, %v470_v4  ;;  %v549_v58 = vmul.f32 %v402_v35, %v402_v35  ;;  %v487_v4 = vsel %vm467_vm2, %v402_v35, 0.0 }
  0xaa   : > { %v574_v6 = vsel %vm467_vm2, %v541_v59, 0.0 }
  0xab   : > { %v575_v16 = vadd.f32 %v574_v6, %v573_v10  ;;  %v590_v6 = vsel %vm467_vm2, %v549_v58, 0.0 }
  0xad   : > { %v380_v41 = vpop.f32.mrf.mxu0  ;;  %v1095_v44 = vpop.f32.mrf.mxu2 }
  0xae   : > { %v1091_v42 = vpop.f32.mrf.mxu1  ;;  %v381_v55 = vadd.f32 %v1102_v47, %v380_v41  ;;  %v1117_v62 = vpop.f32.mrf.mxu3 }
  0xaf   : > { %v405_v36 = vadd.f32 %v1102_v47, %v1091_v42 }
  0xb0   : > { %v542_v1 = vmul.f32 %v381_v55, %v381_v55  ;;  %v473_v7 = vsel %vm467_vm2, %v381_v55, 0.0  ;;  %v548_v55 = vmul.f32 %v399_v31, %v399_v31 }
  0xb1   : > { %v474_v17 = vadd.f32 %v473_v7, %v472_v11  ;;  %v550_v42 = vmul.f32 %v405_v36, %v405_v36  ;;  %v489_v10 = vsel %vm467_vm2, %v405_v36, 0.0 }
  0xb2   : > { %v576_v13 = vsel %vm467_vm2, %v542_v1, 0.0  ;;  %v588_v3 = vsel %vm467_vm2, %v548_v55, 0.0 }
  0xb3   : > { %v577_v21 = vadd.f32 %v576_v13, %v575_v16  ;;  %v592_v16 = vsel %vm467_vm2, %v550_v42, 0.0 }
  0xb5   : > { %v383_v45 = vpop.f32.mrf.mxu0  ;;  %v1108_v52 = vpop.f32.mrf.mxu2 }
  0xb6   : > { %v1097_v46 = vpop.f32.mrf.mxu1  ;;  %v384_v60 = vadd.f32 %v1102_v47, %v383_v45  ;;  %v1135_v30 = vpop.f32.mrf.mxu3 }
  0xb7   : > { %v408_v63 = vadd.f32 %v1102_v47, %v1097_v46 }
  0xb8   : > { %v543_v8 = vmul.f32 %v384_v60, %v384_v60  ;;  %v475_v14 = vsel %vm467_vm2, %v384_v60, 0.0  ;;  %v586_v60 = vsel %vm467_vm2, %v547_v34, 0.0 }
  0xb9   : > { %v476_v22 = vadd.f32 %v475_v14, %v474_v17  ;;  %v551_v46 = vmul.f32 %v408_v63, %v408_v63  ;;  %v491_v17 = vsel %vm467_vm2, %v408_v63, 0.0 }
  0xba   : > { %v578_v18 = vsel %vm467_vm2, %v543_v8, 0.0 }
  0xbb   : > { %v579_v27 = vadd.f32 %v578_v18, %v577_v21  ;;  %v420_v18 = vadd.f32 %v1102_v47, %v1087_v37 }
  0xbd   : > { %v386_v51 = vpop.f32.mrf.mxu0  ;;  %v1126_v12 = vpop.f32.mrf.mxu2 }
  0xbe   : > { %v1112_v57 = vpop.f32.mrf.mxu1  ;;  %v387_v2 = vadd.f32 %v1102_v47, %v386_v51 }
  0xc0   : > { %v544_v15 = vmul.f32 %v387_v2, %v387_v2  ;;  %v477_v19 = vsel %vm467_vm2, %v387_v2, 0.0 }
  0xc1   : > { %v478_v28 = vadd.f32 %v477_v19, %v476_v22  ;;  %v594_v22 = vsel %vm467_vm2, %v551_v46, 0.0 }
  0xc2   : > { %v580_v25 = vsel %vm467_vm2, %v544_v15, 0.0 }
  0xc3   : > { %v581_v38 = vadd.f32 %v580_v25, %v579_v27 }
  0xc5   : > { %v389_v5 = vpop.f32.mrf.mxu0  ;;  %v1142_v53 = vpop.f32.mrf.mxu2 }
  0xc6   : > { %v390_v9 = vadd.f32 %v1102_v47, %v389_v5  ;;  %v413_v23 = vpop.f32.mrf.mxu1  ;;  %v411_v5 = vadd.f32 %v1102_v47, %v1112_v57 }
  0xc7   : > { %v414_v11 = vadd.f32 %v1102_v47, %v413_v23 }
  0xc8   : > { %v545_v20 = vmul.f32 %v390_v9, %v390_v9  ;;  %v479_v26 = vsel %vm467_vm2, %v390_v9, 0.0  ;;  %v1157_v9 = vpop.f32.mrf.mxu3  ;;  %v552_v57 = vmul.f32 %v411_v5, %v411_v5  ;;  %v493_v24 = vsel %vm467_vm2, %v411_v5, 0.0 }
  0xc9   : > { %v480_v41 = vadd.f32 %v479_v26, %v478_v28  ;;  %v553_v23 = vmul.f32 %v414_v11, %v414_v11  ;;  %v423_v28 = vadd.f32 %v1102_v47, %v1089_v40  ;;  %v495_v31 = vsel %vm467_vm2, %v414_v11, 0.0 }
  0xca   : > { %v582_v32 = vsel %vm467_vm2, %v545_v20, 0.0  ;;  %v499_v40 = vsel %vm467_vm2, %v420_v18, 0.0 }
  0xcb   : > { %v583_v50 = vadd.f32 %v582_v32, %v581_v38  ;;  %v426_v32 = vadd.f32 %v1102_v47, %v1095_v44  ;;  %v555_v38 = vmul.f32 %v420_v18, %v420_v18  ;;  %v501_v58 = vsel %vm467_vm2, %v423_v28, 0.0 }
  0xcd   : > { %v392_v29 = vpop.f32.mrf.mxu0  ;;  %v437_v21 = vpop.f32.mrf.mxu2  ;;  %v557_v55 = vmul.f32 %v426_v32, %v426_v32 }
  0xce   : > { %v393_v33 = vadd.f32 %v1102_v47, %v392_v29  ;;  %v416_v2 = vpop.f32.mrf.mxu1  ;;  %v596_v29 = vsel %vm467_vm2, %v552_v57, 0.0 }
  0xcf   : > { %v417_v13 = vadd.f32 %v1102_v47, %v416_v2  ;;  %v606_v2 = vsel %vm467_vm2, %v557_v55, 0.0 }
  0xd0   : > { %v481_v45 = vsel %vm467_vm2, %v393_v33, 0.0  ;;  %v546_v49 = vmul.f32 %v393_v33, %v393_v33 }
  0xd1   : > { %v482_v51 = vadd.f32 %v481_v45, %v480_v41  ;;  %v554_v25 = vmul.f32 %v417_v13, %v417_v13  ;;  %v497_v37 = vsel %vm467_vm2, %v417_v13, 0.0  ;;  %v598_v41 = vsel %vm467_vm2, %v553_v23, 0.0 }
  0xd2   : > { %v584_v56 = vsel %vm467_vm2, %v546_v49, 0.0  ;;  %v450_v23 = vadd.f32 %v1102_v47, %v1117_v62 }
  0xd3   : > { %v484_v39 = vadd.f32 %v483_v54, %v482_v51  ;;  %v585_v59 = vadd.f32 %v584_v56, %v583_v50  ;;  %v600_v34 = vsel %vm467_vm2, %v554_v25, 0.0  ;;  %v1177_v50 = vpop.f32.mrf.mxu3  ;;  %v556_v51 = vmul.f32 %v423_v28, %v423_v28 }
  0xd4   : > { %v429_v54 = vadd.f32 %v1102_v47, %v1108_v52  ;;  %v602_v56 = vsel %vm467_vm2, %v555_v38, 0.0  ;;  %v435_v52 = vadd.f32 %v1102_v47, %v1142_v53  ;;  %v444_v53 = vadd.f32 %v1102_v47, %v1093_v43 }
  0xd5   : > { %v486_v0 = vadd.f32 %v485_v61, %v484_v39  ;;  %v587_v1 = vadd.f32 %v586_v60, %v585_v59  ;;  %v432_v39 = vadd.f32 %v1102_v47, %v1126_v12  ;;  %v440_v61 = vpop.f32.mrf.mxu2  ;;  %v604_v63 = vsel %vm467_vm2, %v556_v51, 0.0 }
  0xd6   : > { %v505_v42 = vsel %vm467_vm2, %v429_v54, 0.0  ;;  %v438_v12 = vadd.f32 %v1102_v47, %v437_v21  ;;  %v560_v11 = vmul.f32 %v435_v52, %v435_v52  ;;  %v447_v21 = vadd.f32 %v1102_v47, %v1104_v48 }
  0xd7   : > { %v589_v7 = vadd.f32 %v588_v3, %v587_v1  ;;  %v488_v8 = vadd.f32 %v487_v4, %v486_v0  ;;  %v503_v0 = vsel %vm467_vm2, %v426_v32, 0.0  ;;  %v558_v1 = vmul.f32 %v429_v54, %v429_v54 }
  0xd8   : > { %v559_v5 = vmul.f32 %v432_v39, %v432_v39  ;;  %v507_v46 = vsel %vm467_vm2, %v432_v39, 0.0  ;;  %v561_v57 = vmul.f32 %v438_v12, %v438_v12  ;;  %v515_v48 = vsel %vm467_vm2, %v444_v53, 0.0 }
  0xd9   : > { %v490_v14 = vadd.f32 %v489_v10, %v488_v8  ;;  %v591_v15 = vadd.f32 %v590_v6, %v589_v7  ;;  %v441_v6 = vadd.f32 %v1102_v47, %v440_v61  ;;  %v608_v10 = vsel %vm467_vm2, %v558_v1, 0.0 }
  0xda   : > { %v614_v28 = vsel %vm467_vm2, %v561_v57, 0.0  ;;  %v564_v32 = vmul.f32 %v447_v21, %v447_v21  ;;  %v519_v55 = vsel %vm467_vm2, %v450_v23, 0.0 }
  0xdb   : > { %v492_v19 = vadd.f32 %v491_v17, %v490_v14  ;;  %v593_v20 = vadd.f32 %v592_v16, %v591_v15  ;;  %v461_v15 = vpop.f32.mrf.mxu3  ;;  %v610_v16 = vsel %vm467_vm2, %v559_v5, 0.0  ;;  %v509_v17 = vsel %vm467_vm2, %v435_v52, 0.0 }
  0xdc   : > { %v562_v18 = vmul.f32 %v441_v6, %v441_v6  ;;  %v513_v43 = vsel %vm467_vm2, %v441_v6, 0.0  ;;  %v620_v54 = vsel %vm467_vm2, %v564_v32, 0.0 }
  0xdd   : > { %v494_v26 = vadd.f32 %v493_v24, %v492_v19  ;;  %v595_v27 = vadd.f32 %v594_v22, %v593_v20  ;;  %v612_v22 = vsel %vm467_vm2, %v560_v11, 0.0  ;;  %v511_v24 = vsel %vm467_vm2, %v438_v12, 0.0 }
  0xdf   : > { %v597_v33 = vadd.f32 %v596_v29, %v595_v27  ;;  %v496_v35 = vadd.f32 %v495_v31, %v494_v26  ;;  %v563_v27 = vmul.f32 %v444_v53, %v444_v53  ;;  %v616_v29 = vsel %vm467_vm2, %v562_v18, 0.0 }
  0xe1   : > { %v599_v45 = vadd.f32 %v598_v41, %v597_v33  ;;  %v498_v49 = vadd.f32 %v497_v37, %v496_v35  ;;  %v453_v33 = vadd.f32 %v1102_v47, %v1135_v30  ;;  %v565_v35 = vmul.f32 %v450_v23, %v450_v23 }
  0xe2   : > { %v618_v62 = vsel %vm467_vm2, %v563_v27, 0.0  ;;  %v459_v30 = vadd.f32 %v1102_v47, %v1177_v50 }
  0xe3   : > { %v500_v36 = vadd.f32 %v499_v40, %v498_v49  ;;  %v601_v44 = vadd.f32 %v600_v34, %v599_v45  ;;  %v517_v34 = vsel %vm467_vm2, %v447_v21, 0.0  ;;  %v456_v45 = vadd.f32 %v1102_v47, %v1157_v9  ;;  %v464_v51 = vpop.f32.mrf.mxu3 }
  0xe4   : > { %v521_v39 = vsel %vm467_vm2, %v453_v33, 0.0  ;;  %v462_v9 = vadd.f32 %v1102_v47, %v461_v15  ;;  %v568_v52 = vmul.f32 %v459_v30, %v459_v30 }
  0xe5   : > { %v502_v59 = vadd.f32 %v501_v58, %v500_v36  ;;  %v603_v60 = vadd.f32 %v602_v56, %v601_v44  ;;  %v566_v36 = vmul.f32 %v453_v33, %v453_v33  ;;  %v622_v44 = vsel %vm467_vm2, %v565_v35, 0.0 }
  0xe6   : > { %v523_v1 = vsel %vm467_vm2, %v456_v45, 0.0 }
  0xe7   : > { %v605_v3 = vadd.f32 %v604_v63, %v603_v60  ;;  %v504_v4 = vadd.f32 %v503_v0, %v502_v59  ;;  %v567_v59 = vmul.f32 %v456_v45, %v456_v45  ;;  %v465_v60 = vadd.f32 %v1102_v47, %v464_v51 }
  0xe8   : > { %v624_v0 = vsel %vm467_vm2, %v566_v36, 0.0  ;;  %v628_v47 = vsel %vm467_vm2, %v568_v52, 0.0 }
  0xe9   : > { %v506_v7 = vadd.f32 %v505_v42, %v504_v4  ;;  %v607_v8 = vadd.f32 %v606_v2, %v605_v3  ;;  %v626_v3 = vsel %vm467_vm2, %v567_v59, 0.0  ;;  %v525_v4 = vsel %vm467_vm2, %v459_v30, 0.0 }
  0xea   : > { %v569_v42 = vmul.f32 %v462_v9, %v462_v9  ;;  %v570_v5 = vmul.f32 %v465_v60, %v465_v60 }
  0xeb   : > { %v508_v13 = vadd.f32 %v507_v46, %v506_v7  ;;  %v609_v14 = vadd.f32 %v608_v10, %v607_v8  ;;  %v527_v7 = vsel %vm467_vm2, %v462_v9, 0.0  ;;  %v529_v8 = vsel %vm467_vm2, %v465_v60, 0.0 }
  0xec   : > { %v630_v11 = vsel %vm467_vm2, %v569_v42, 0.0  ;;  %v632_v53 = vsel %vm467_vm2, %v570_v5, 0.0 }
  0xed   : > { %v510_v19 = vadd.f32 %v509_v17, %v508_v13  ;;  %v611_v20 = vadd.f32 %v610_v16, %v609_v14 }
  0xef   : > { %v613_v25 = vadd.f32 %v612_v22, %v611_v20  ;;  %v512_v26 = vadd.f32 %v511_v24, %v510_v19 }
  0xf1   : > { %v615_v31 = vadd.f32 %v614_v28, %v613_v25  ;;  %v514_v37 = vadd.f32 %v513_v43, %v512_v26 }
  0xf3   : > { %v516_v38 = vadd.f32 %v515_v48, %v514_v37  ;;  %v617_v41 = vadd.f32 %v616_v29, %v615_v31 }
  0xf5   : > { %v518_v49 = vadd.f32 %v517_v34, %v516_v38  ;;  %v619_v40 = vadd.f32 %v618_v62, %v617_v41 }
  0xf7   : > { %v621_v56 = vadd.f32 %v620_v54, %v619_v40  ;;  %v520_v58 = vadd.f32 %v519_v55, %v518_v49 }
  0xf9   : > { %v522_v61 = vadd.f32 %v521_v39, %v520_v58  ;;  %v623_v63 = vadd.f32 %v622_v44, %v621_v56 }
  0xfb   : > { %v524_v2 = vadd.f32 %v523_v1, %v522_v61  ;;  %v625_v50 = vadd.f32 %v624_v0, %v623_v63 }
  0xfd   : > { %v526_v12 = vadd.f32 %v525_v4, %v524_v2  ;;  %v627_v6 = vadd.f32 %v626_v3, %v625_v50 }
  0xff   : > { %v629_v10 = vadd.f32 %v628_v47, %v627_v6  ;;  %v528_v46 = vadd.f32 %v527_v7, %v526_v12 }
 0x101   : > { %v631_v13 = vadd.f32 %v630_v11, %v629_v10  ;;  %v530_v14 = vadd.f32 %v529_v8, %v528_v46 }
 0x103   : > { %v531_v15 = vrot.slane %v530_v14, 4  ;;  %v633_v16 = vadd.f32 %v632_v53, %v631_v13 }
 0x105   : > { %v532_v17 = vadd.f32 %v531_v15, %v530_v14  ;;  %v634_v57 = vrot.slane %v633_v16, 4 }
 0x107   : > { %v533_v18 = vrot.slane %v532_v17, 2  ;;  %v635_v19 = vadd.f32 %v634_v57, %v633_v16 }
 0x109   : > { %v534_v20 = vadd.f32 %v533_v18, %v532_v17  ;;  %v636_v21 = vrot.slane %v635_v19, 2 }
 0x10b   : > { %v535_v22 = vrot.slane %v534_v20, 1  ;;  %v637_v24 = vadd.f32 %v636_v21, %v635_v19 }
 0x10d   : > { %v536_v43 = vadd.f32 %v535_v22, %v534_v20  ;;  %v638_v23 = vrot.slane %v637_v24, 1 }
 0x10f   : > { %538 = vst.msk [vmem:[%s202_s21] sm:$0x1] %vm537_vm3, %v536_v43  ;;  %v639_v25 = vadd.f32 %v638_v23, %v637_v24 }
 0x111   : > { %640 = vst.msk [vmem:[%s202_s21 + $0x1] sm:$0x1] %vm537_vm3, %v639_v25 }
 0x112   : > { %886 = shalt.err (!%p883_p5)
}
 0x113   : > { %803 = dma.vmem_to_hbm [thread:$0]  (%p999_p4), %s656_s23, 32, %s658_s26, %s642_s15  }
 0x114 PF: > { %p809_p6 = scmp.ge.s32.totalorder %s937_s17, 2  ;;  %s669_s7 = sand.u32 1, %s917_s12  }
 0x115   : > { %s670_s8 = scalar_lea.sflag [#allocation3], %s669_s7 }
 0x116   : > { %p806_p7 = pnand %p809_p6, %p1006_p8 }
 0x118   : > { %p807_p9 = pneg %p806_p7 }
 0x11a   : > { %912 = dma.done.wait (%p807_p9), %s670_s8, 32  }
 0x11b   : > { %914 = vsyncadd (%p807_p9), %s670_s8, 4294967264  ;;  %s16_s17 = sadd.s32 1, %s937_s17   ;;  %s1276_s12 = smov %s921_s13 }
 0x11c   : > { %p13_p10 = scmp.ge.s32.totalorder %s16_s17, 4   ;;  %s1277_s13 = smov %s925_s14 }
 0x11d   : > { %s1278_s14 = smov %s1012_s25  ;;  %s1279_s15 = smov %s933_s16 }
 0x11e   : > { %s1280_s16 = smov %s1282_s20  ;;  %15 = sbr.rel (!%p13_p10) target bundleno = 4 (0x4), region = 73 }
 0x123   :  { %676 = vsyncpa [#allocation3], 1 }
 0x124   :  { %678 = vsyncpa [#allocation3 + $0x1], 1 }

</bundles_post_ra>
